<compile_context>
chip_gen: v5e
topology: v5e:2x2
jax: 0.10.0
libtpu: 0.0.40
codegen_flags: <defaults>
</compile_context>

<pallas_src>
import functools

import jax
import jax.numpy as jnp
from jax import lax
from jax.experimental import pallas as pl
from jax.experimental.pallas import tpu as pltpu


def _ceil_div(a, b):
    return -(-a // b)


def _maxpool_kernel(x_ref, o_ref, rm_ref, *, kernel_size, stride,
                    pad_top, pad_left, out_h, out_w):
    # x_ref:  (H, W, TC)       channels-on-lanes input block (VMEM)
    # o_ref:  (out_h, out_w, TC)
    # rm_ref: (out_h, W, TC)   row-max temp (VMEM scratch, rewritten every step)
    k, s = kernel_size, stride
    H, W, TC = x_ref.shape
    zero = jnp.zeros((), dtype=x_ref.dtype)

    def sds(start, n):
        # static start/size; strided only when needed
        return pl.ds(start, n, s) if s > 1 else pl.ds(start, n)

    # ---------------- stage 1: max over kh (leading dim) into rm_ref ----------------
    # Output rows whose kh-window stays fully inside [0, H): value-level accumulation,
    # one store.  Border rows (window touches zero padding) handled individually below.
    int_lo = min(_ceil_div(pad_top, s), out_h)
    int_hi = max(int_lo, min(_ceil_div(H - k + 1 + pad_top, s), out_h))
    if int_hi > int_lo:
        n_int = int_hi - int_lo
        acc = x_ref[sds(int_lo * s - pad_top, n_int), :, :]
        for kh in range(1, k):
            acc = jnp.maximum(acc, x_ref[sds(int_lo * s + kh - pad_top, n_int), :, :])
        rm_ref[int_lo:int_hi, :, :] = acc
    for oh in list(range(0, int_lo)) + list(range(int_hi, out_h)):
        r0 = oh * s - pad_top
        valid = [r0 + kh for kh in range(k) if 0 <= r0 + kh < H]
        if valid:
            acc = x_ref[valid[0]:valid[0] + 1, :, :]
            for r in valid[1:]:
                acc = jnp.maximum(acc, x_ref[r:r + 1, :, :])
            # padded rows are zeros and participate in the max (PyTorch F.pad semantics)
            rm_ref[oh:oh + 1, :, :] = jnp.maximum(acc, zero)
        else:
            rm_ref[oh:oh + 1, :, :] = jnp.zeros((1, W, TC), x_ref.dtype)

    # ---------------- stage 2: max over kw (sublane dim) into o_ref -----------------
    int_lo_w = min(_ceil_div(pad_left, s), out_w)
    int_hi_w = max(int_lo_w, min(_ceil_div(W - k + 1 + pad_left, s), out_w))
    if int_hi_w > int_lo_w:
        n_int_w = int_hi_w - int_lo_w
        acc = rm_ref[:, sds(int_lo_w * s - pad_left, n_int_w), :]
        for kw in range(1, k):
            acc = jnp.maximum(acc, rm_ref[:, sds(int_lo_w * s + kw - pad_left, n_int_w), :])
        o_ref[:, int_lo_w:int_hi_w, :] = acc
    for ow in list(range(0, int_lo_w)) + list(range(int_hi_w, out_w)):
        c0 = ow * s - pad_left
        valid = [c0 + kw for kw in range(k) if 0 <= c0 + kw < W]
        if valid:
            acc = rm_ref[:, valid[0]:valid[0] + 1, :]
            for c in valid[1:]:
                acc = jnp.maximum(acc, rm_ref[:, c:c + 1, :])
            o_ref[:, ow:ow + 1, :] = jnp.maximum(acc, zero)
        else:
            o_ref[:, ow:ow + 1, :] = jnp.zeros((out_h, 1, TC), x_ref.dtype)


def _pick_tc(nc, h, w, itemsize):
    """Channel-tile (lane) size: multiple of 128 targeting ~4 MiB of input per step."""
    if nc <= 128:
        return nc                       # full minor dim: allowed even when < 128
    budget = 4 * 1024 * 1024            # per-step input-block bytes (HBM-bound sweet spot)
    max_tc = (budget // max(1, h * w * itemsize)) // 128 * 128
    max_tc = max(128, min(max_tc, (nc // 128) * 128, 1024))
    tc = max_tc
    for t in range(max_tc, 127, -128):  # prefer a divisor of nc (no ragged last block)
        if nc % t == 0:
            tc = t
            break
    # v7x has 2 TensorCores: keep several "parallel" grid steps when possible.
    while tc > 128 and pl.cdiv(nc, tc) < 4:
        tc -= 128
    return tc


def _vmem_limit_bytes():
    cap = 128 * 1024 * 1024
    try:
        cap = int(pltpu.get_tpu_info().vmem_capacity_bytes)
    except Exception:
        pass
    # ~96 MiB on v5e/v6e (128 MiB physical), ~48 MiB on v7x (64 MiB physical)
    return min(cap * 3 // 4, 96 * 1024 * 1024)


def maxpool2d_same_padding_channels_last(x_hwc, kernel_size, stride):
    """Pallas core: 'same'-padded max pool on a channels-last (H, W, NC) tensor."""
    H, W, NC = x_hwc.shape
    pad = max(kernel_size - stride, 0)
    pad_top, pad_left = pad // 2, pad // 2
    out_h = (H + pad - kernel_size) // stride + 1
    out_w = (W + pad - kernel_size) // stride + 1

    TC = _pick_tc(NC, H, W, x_hwc.dtype.itemsize)

    kern = functools.partial(
        _maxpool_kernel,
        kernel_size=kernel_size, stride=stride,
        pad_top=pad_top, pad_left=pad_left,
        out_h=out_h, out_w=out_w,
    )

    return pl.pallas_call(
        kern,
        out_shape=jax.ShapeDtypeStruct((out_h, out_w, NC), x_hwc.dtype),
        grid=(pl.cdiv(NC, TC),),
        in_specs=[pl.BlockSpec((H, W, TC), lambda c: (0, 0, c))],
        out_specs=pl.BlockSpec((out_h, out_w, TC), lambda c: (0, 0, c)),
        scratch_shapes=[pltpu.VMEM((out_h, W, TC), x_hwc.dtype)],
        compiler_params=pltpu.CompilerParams(
            dimension_semantics=("parallel",),
            vmem_limit_bytes=_vmem_limit_bytes(),
        ),
    )(x_hwc)


def maxpool2d_same_padding(x, kernel_size, stride):
    """NCHW wrapper matching MaxPool2dSamePadding.forward (NCHW in, NCHW out).

    TODO(synk): the two relayout transposes here are separate XLA HBM passes; in a
    full model keep activations channels-last between ops (use the channels-last
    entry point above) to avoid them.
    """
    N, C, H, W = x.shape
    xt = jnp.transpose(x, (2, 3, 0, 1)).reshape(H, W, N * C)
    out = maxpool2d_same_padding_channels_last(xt, kernel_size, stride)
    out_h, out_w, _ = out.shape
    return jnp.transpose(out.reshape(out_h, out_w, N, C), (2, 3, 0, 1))


def _reference_maxpool(x, kernel_size, stride):
    # Pure-JAX reference mirroring the PyTorch semantics (zero pad, then valid max-pool).
    pad = max(kernel_size - stride, 0)
    pt, pb = pad // 2, pad - pad // 2
    xp = jnp.pad(x, ((0, 0), (0, 0), (pt, pb), (pt, pb)))
    return lax.reduce_window(
        xp,
        -jnp.inf,
        lax.max,
        window_dimensions=(1, 1, kernel_size, kernel_size),
        window_strides=(1, 1, stride, stride),
        padding="VALID",
    )


if __name__ == "__main__":
    key = jax.random.PRNGKey(0)
    # small NCHW input consistent with the module's forward
    x = jax.random.normal(key, (2, 4, 16, 16), dtype=jnp.float32)

    # EfficientDet-style config: kernel 3, stride 2 ("same" padding, zeros in the max)
    y = maxpool2d_same_padding(x, 3, 2)
    y = jax.block_until_ready(y)
    y_ref = _reference_maxpool(x, 3, 2)
    assert y.shape == (2, 4, 8, 8), y.shape
    assert jnp.allclose(y, y_ref, atol=1e-6), "mismatch vs reference (k=3, s=2)"

    # stride-1 config exercises symmetric padding on both borders
    y1 = jax.block_until_ready(maxpool2d_same_padding(x, 3, 1))
    y1_ref = _reference_maxpool(x, 3, 1)
    assert y1.shape == (2, 4, 16, 16), y1.shape
    assert jnp.allclose(y1, y1_ref, atol=1e-6), "mismatch vs reference (k=3, s=1)"

    print("KERNEL_OK")
</pallas_src>

<mosaic_0001>
module attributes {stable_mosaic.version = 11 : i64} {
  func.func @_maxpool_kernel(%arg0: i32, %arg1: memref<16x16x8xf32, #tpu.memory_space<vmem>>, %arg2: memref<8x8x8xf32, #tpu.memory_space<vmem>>, %arg3: memref<8x16x8xf32, #tpu.memory_space<vmem>>) attributes {dimension_semantics = [#tpu.dimension_semantics<parallel>], iteration_bounds = array<i64: 1>, scalar_prefetch = 0 : i64, scratch_operands = 1 : i64, tpu.core_type = #tpu.core_type<tc>, window_params = [{transform_indices = @transform_0, window_bounds = array<i64: 16, 16, 8>}, {transform_indices = @transform_1, window_bounds = array<i64: 8, 8, 8>}]} {
    %c0 = arith.constant 0 : index
    %c0_0 = arith.constant 0 : index
    %c0_1 = arith.constant 0 : index
    %0 = tpu.strided_load %arg1[%c0, %c0_0, %c0_1] {strides = array<i32: 2, 1, 1>} : memref<16x16x8xf32, #tpu.memory_space<vmem>>, vector<7x16x8xf32>
    %c1 = arith.constant 1 : index
    %c0_2 = arith.constant 0 : index
    %c0_3 = arith.constant 0 : index
    %1 = tpu.strided_load %arg1[%c1, %c0_2, %c0_3] {strides = array<i32: 2, 1, 1>} : memref<16x16x8xf32, #tpu.memory_space<vmem>>, vector<7x16x8xf32>
    %2 = arith.maximumf %0, %1 : vector<7x16x8xf32>
    %c2 = arith.constant 2 : index
    %c0_4 = arith.constant 0 : index
    %c0_5 = arith.constant 0 : index
    %3 = tpu.strided_load %arg1[%c2, %c0_4, %c0_5] {strides = array<i32: 2, 1, 1>} : memref<16x16x8xf32, #tpu.memory_space<vmem>>, vector<7x16x8xf32>
    %4 = arith.maximumf %2, %3 : vector<7x16x8xf32>
    %c0_6 = arith.constant 0 : index
    %c0_7 = arith.constant 0 : index
    %c0_8 = arith.constant 0 : index
    %5 = vector.load %arg3[%c0_6, %c0_7, %c0_8] : memref<8x16x8xf32, #tpu.memory_space<vmem>>, vector<7x16x8xf32>
    tpu.vector_store %arg3[%c0_6, %c0_7, %c0_8], %4 {strides = array<i32>} : memref<8x16x8xf32, #tpu.memory_space<vmem>>, vector<7x16x8xf32>,
    %c14 = arith.constant 14 : index
    %c0_9 = arith.constant 0 : index
    %c0_10 = arith.constant 0 : index
    %6 = vector.load %arg1[%c14, %c0_9, %c0_10] : memref<16x16x8xf32, #tpu.memory_space<vmem>>, vector<1x16x8xf32>
    %c15 = arith.constant 15 : index
    %c0_11 = arith.constant 0 : index
    %c0_12 = arith.constant 0 : index
    %7 = vector.load %arg1[%c15, %c0_11, %c0_12] : memref<16x16x8xf32, #tpu.memory_space<vmem>>, vector<1x16x8xf32>
    %8 = arith.maximumf %6, %7 : vector<1x16x8xf32>
    %cst = arith.constant 0.000000e+00 : f32
    %9 = vector.broadcast %cst : f32 to vector<1x16x8xf32>
    %10 = arith.maximumf %8, %9 : vector<1x16x8xf32>
    %c7 = arith.constant 7 : index
    %c0_13 = arith.constant 0 : index
    %c0_14 = arith.constant 0 : index
    %11 = vector.load %arg3[%c7, %c0_13, %c0_14] : memref<8x16x8xf32, #tpu.memory_space<vmem>>, vector<1x16x8xf32>
    tpu.vector_store %arg3[%c7, %c0_13, %c0_14], %10 {strides = array<i32>} : memref<8x16x8xf32, #tpu.memory_space<vmem>>, vector<1x16x8xf32>,
    %c0_15 = arith.constant 0 : index
    %c0_16 = arith.constant 0 : index
    %c0_17 = arith.constant 0 : index
    %12 = tpu.strided_load %arg3[%c0_15, %c0_16, %c0_17] {strides = array<i32: 1, 2, 1>} : memref<8x16x8xf32, #tpu.memory_space<vmem>>, vector<8x7x8xf32>
    %c0_18 = arith.constant 0 : index
    %c1_19 = arith.constant 1 : index
    %c0_20 = arith.constant 0 : index
    %13 = tpu.strided_load %arg3[%c0_18, %c1_19, %c0_20] {strides = array<i32: 1, 2, 1>} : memref<8x16x8xf32, #tpu.memory_space<vmem>>, vector<8x7x8xf32>
    %14 = arith.maximumf %12, %13 : vector<8x7x8xf32>
    %c0_21 = arith.constant 0 : index
    %c2_22 = arith.constant 2 : index
    %c0_23 = arith.constant 0 : index
    %15 = tpu.strided_load %arg3[%c0_21, %c2_22, %c0_23] {strides = array<i32: 1, 2, 1>} : memref<8x16x8xf32, #tpu.memory_space<vmem>>, vector<8x7x8xf32>
    %16 = arith.maximumf %14, %15 : vector<8x7x8xf32>
    %c0_24 = arith.constant 0 : index
    %c0_25 = arith.constant 0 : index
    %c0_26 = arith.constant 0 : index
    %17 = vector.load %arg2[%c0_24, %c0_25, %c0_26] : memref<8x8x8xf32, #tpu.memory_space<vmem>>, vector<8x7x8xf32>
    tpu.vector_store %arg2[%c0_24, %c0_25, %c0_26], %16 {strides = array<i32>} : memref<8x8x8xf32, #tpu.memory_space<vmem>>, vector<8x7x8xf32>,
    %c0_27 = arith.constant 0 : index
    %c14_28 = arith.constant 14 : index
    %c0_29 = arith.constant 0 : index
    %18 = vector.load %arg3[%c0_27, %c14_28, %c0_29] : memref<8x16x8xf32, #tpu.memory_space<vmem>>, vector<8x1x8xf32>
    %c0_30 = arith.constant 0 : index
    %c15_31 = arith.constant 15 : index
    %c0_32 = arith.constant 0 : index
    %19 = vector.load %arg3[%c0_30, %c15_31, %c0_32] : memref<8x16x8xf32, #tpu.memory_space<vmem>>, vector<8x1x8xf32>
    %20 = arith.maximumf %18, %19 : vector<8x1x8xf32>
    %cst_33 = arith.constant 0.000000e+00 : f32
    %21 = vector.broadcast %cst_33 : f32 to vector<8x1x8xf32>
    %22 = arith.maximumf %20, %21 : vector<8x1x8xf32>
    %c0_34 = arith.constant 0 : index
    %c7_35 = arith.constant 7 : index
    %c0_36 = arith.constant 0 : index
    %23 = vector.load %arg2[%c0_34, %c7_35, %c0_36] : memref<8x8x8xf32, #tpu.memory_space<vmem>>, vector<8x1x8xf32>
    tpu.vector_store %arg2[%c0_34, %c7_35, %c0_36], %22 {strides = array<i32>} : memref<8x8x8xf32, #tpu.memory_space<vmem>>, vector<8x1x8xf32>,
    return
  }
  func.func @transform_0(%arg0: i32) -> (i32, i32, i32) {
    %c0_i32 = arith.constant 0 : i32
    %c0_i32_0 = arith.constant 0 : i32
    %c0_i32_1 = arith.constant 0 : i32
    return %c0_i32, %c0_i32_0, %arg0 : i32, i32, i32
  }
  func.func @transform_1(%arg0: i32) -> (i32, i32, i32) {
    %c0_i32 = arith.constant 0 : i32
    %c0_i32_0 = arith.constant 0 : i32
    %c0_i32_1 = arith.constant 0 : i32
    return %c0_i32, %c0_i32_0, %arg0 : i32, i32, i32
  }
}

</mosaic_0001>

<bundles_post_ra>
// kernel: tpu_custom_call.1
= control target key start
LH: loop header
LB: loop body
LE: loop exit
PB: predicated region body
PF: predicated region fallthrough
CT: control target
= control target key end

     0   :  { %vm81_vm0 = vcmask 64512   ;;  %s445_s0 = inlined_call_operand.vmem [shape: f32[16,16,8], index: 0, kind: input, shape index: {}]   ;;  %s446_s1 = inlined_call_operand.hbm [shape: f32[8,8,8], index: 1, kind: output, shape index: {}]  }
   0x1   :  { %v9_v0 = vld [vmem:[%s445_s0] sm:$0xff]  ;;  %v240_v1 = vld [vmem:[%s445_s0 + $0x10] sm:$0xff]  ;;  %v10_v4 = vld [vmem:[%s445_s0 + $0x8] sm:$0xff] }
   0x2   :  { %v254_v2 = vld [vmem:[%s445_s0 + $0x20] sm:$0xff]  ;;  %v38_v3 = vmax.f32 %v9_v0, %v240_v1  ;;  %v241_v5 = vld [vmem:[%s445_s0 + $0x18] sm:$0xff]  ;;  %v255_v6 = vld [vmem:[%s445_s0 + $0x28] sm:$0xff] }
   0x3   :  { %v39_v7 = vmax.f32 %v10_v4, %v241_v5  ;;  %v242_v8 = vld [vmem:[%s445_s0 + $0x30] sm:$0xff]  ;;  %v256_v9 = vld [vmem:[%s445_s0 + $0x40] sm:$0xff]  ;;  %v243_v10 = vld [vmem:[%s445_s0 + $0x38] sm:$0xff] }
   0x4   :  { %v67_v11 = vmax.f32 %v38_v3, %v254_v2  ;;  %v40_v12 = vmax.f32 %v254_v2, %v242_v8  ;;  %v41_v13 = vmax.f32 %v255_v6, %v243_v10  ;;  %v257_v14 = vld [vmem:[%s445_s0 + $0x48] sm:$0xff]  ;;  %v244_v15 = vld [vmem:[%s445_s0 + $0x50] sm:$0xff]  ;;  %v258_v16 = vld [vmem:[%s445_s0 + $0x60] sm:$0xff] }
   0x5   :  { %v68_v17 = vmax.f32 %v39_v7, %v255_v6  ;;  %v42_v18 = vmax.f32 %v256_v9, %v244_v15  ;;  %v245_v19 = vld [vmem:[%s445_s0 + $0x58] sm:$0xff]  ;;  %v259_v20 = vld [vmem:[%s445_s0 + $0x68] sm:$0xff]  ;;  %v246_v21 = vld [vmem:[%s445_s0 + $0x70] sm:$0xff] }
   0x6   :  { %82 = vst.msk [vmem:[#allocation2] sm:$0xff] %vm81_vm0, %v67_v11  ;;  %v69_v22 = vmax.f32 %v40_v12, %v256_v9  ;;  %v70_v23 = vmax.f32 %v41_v13, %v257_v14  ;;  %v43_v24 = vmax.f32 %v257_v14, %v245_v19  ;;  %v44_v25 = vmax.f32 %v258_v16, %v246_v21  ;;  %v260_v26 = vld [vmem:[%s445_s0 + $0x80] sm:$0xff]  ;;  %v247_v27 = vld [vmem:[%s445_s0 + $0x78] sm:$0xff]  ;;  %v261_v28 = vld [vmem:[%s445_s0 + $0x88] sm:$0xff] }
   0x7   :  { %83 = vst.msk [vmem:[#allocation2 + $0x8] sm:$0xff] %vm81_vm0, %v68_v17  ;;  %v71_v29 = vmax.f32 %v42_v18, %v258_v16  ;;  %v45_v30 = vmax.f32 %v259_v20, %v247_v27  ;;  %v248_v31 = vld [vmem:[%s445_s0 + $0x90] sm:$0xff]  ;;  %v262_v32 = vld [vmem:[%s445_s0 + $0xa0] sm:$0xff]  ;;  %v249_v33 = vld [vmem:[%s445_s0 + $0x98] sm:$0xff] }
   0x8   :  { %84 = vst.msk [vmem:[#allocation2 + $0x10] sm:$0xff] %vm81_vm0, %v69_v22  ;;  %v72_v34 = vmax.f32 %v43_v24, %v259_v20  ;;  %v73_v35 = vmax.f32 %v44_v25, %v260_v26  ;;  %v46_v36 = vmax.f32 %v260_v26, %v248_v31  ;;  %v47_v37 = vmax.f32 %v261_v28, %v249_v33  ;;  %v263_v38 = vld [vmem:[%s445_s0 + $0xa8] sm:$0xff]  ;;  %v250_v39 = vld [vmem:[%s445_s0 + $0xb0] sm:$0xff]  ;;  %v264_v40 = vld [vmem:[%s445_s0 + $0xc0] sm:$0xff] }
   0x9   :  { %85 = vst.msk [vmem:[#allocation2 + $0x18] sm:$0xff] %vm81_vm0, %v70_v23  ;;  %v74_v41 = vmax.f32 %v45_v30, %v261_v28  ;;  %v48_v42 = vmax.f32 %v262_v32, %v250_v39  ;;  %v251_v43 = vld [vmem:[%s445_s0 + $0xb8] sm:$0xff]  ;;  %v265_v44 = vld [vmem:[%s445_s0 + $0xc8] sm:$0xff]  ;;  %v252_v45 = vld [vmem:[%s445_s0 + $0xd0] sm:$0xff] }
   0xa   :  { %86 = vst.msk [vmem:[#allocation2 + $0x20] sm:$0xff] %vm81_vm0, %v71_v29  ;;  %v75_v46 = vmax.f32 %v46_v36, %v262_v32  ;;  %v49_v47 = vmax.f32 %v263_v38, %v251_v43  ;;  %v50_v48 = vmax.f32 %v264_v40, %v252_v45  ;;  %v266_v49 = vld [vmem:[%s445_s0 + $0xe0] sm:$0xff]  ;;  %v253_v50 = vld [vmem:[%s445_s0 + $0xd8] sm:$0xff]  ;;  %v267_v51 = vld [vmem:[%s445_s0 + $0xe8] sm:$0xff]  ;;  %v76_v52 = vmax.f32 %v47_v37, %v263_v38 }
   0xb   :  { %87 = vst.msk [vmem:[#allocation2 + $0x28] sm:$0xff] %vm81_vm0, %v72_v34  ;;  %v51_v53 = vmax.f32 %v265_v44, %v253_v50  ;;  %v270_v54 = vld [vmem:[%s445_s0 + $0xf0] sm:$0xff]  ;;  %v271_v55 = vld [vmem:[%s445_s0 + $0xf8] sm:$0xff] }
   0xc   :  { %6 = vsyncpa [#allocation4], 0  ;;  %88 = vst.msk [vmem:[#allocation2 + $0x30] sm:$0xff] %vm81_vm0, %v73_v35  ;;  %v77_v56 = vmax.f32 %v48_v42, %v264_v40  ;;  %v102_v57 = vmax.f32 %v266_v49, %v270_v54  ;;  %v78_v58 = vmax.f32 %v49_v47, %v265_v44  ;;  %v103_v59 = vmax.f32 %v267_v51, %v271_v55  ;;  %s301_s0 = smov [#allocation3]   ;;  %s228_s15 = sshll.u32 %s446_s1, 4  ;;  %s229_s15 = int_to_ptr.hbm [resolvable:$true] %s228_s15 }
   0xd   :  { %89 = vst.msk [vmem:[#allocation2 + $0x38] sm:$0xff] %vm81_vm0, %v74_v41  ;;  %v79_v60 = vmax.f32 %v50_v48, %v266_v49  ;;  %v80_v62 = vmax.f32 %v51_v53, %v267_v51  ;;  %vm172_vm1 = vcmask 63488   ;;  %vm213_vm2 = vcmask 57344   ;;  %s226_s12 = sshll.u32 %s301_s0, 4  ;;  %s302_s16 = smov 128   ;;  %s227_s12 = int_to_ptr.vmem [resolvable:$true] %s226_s12 }
   0xe   :  { %90 = vst.msk [vmem:[#allocation2 + $0x40] sm:$0xff] %vm81_vm0, %v75_v46  ;;  %v109_v61 = vld [vmem:[#allocation2] ss:$2 sm:$0x7f]  ;;  %v104_v0 = vmax.f32 %v102_v57, 0.0  ;;  %v105_v3 = vmax.f32 %v103_v59, 0.0 }
   0xf   :  { %91 = vst.msk [vmem:[#allocation2 + $0x48] sm:$0xff] %vm81_vm0, %v76_v52  ;;  %v125_v63 = vld [vmem:[#allocation2 + $0x1] ss:$2 sm:$0x7f]  ;;  %v181_v10 = vld [vmem:[#allocation2 + $0xe] sm:$0x1] }
  0x10   :  { %92 = vst.msk [vmem:[#allocation2 + $0x50] sm:$0xff] %vm81_vm0, %v77_v56  ;;  %v140_v1 = vmax.f32 %v109_v61, %v125_v63  ;;  %v149_v2 = vld [vmem:[#allocation2 + $0x2] ss:$2 sm:$0x7f]  ;;  %v189_v11 = vld [vmem:[#allocation2 + $0xf] sm:$0x1] }
  0x11   :  { %93 = vst.msk [vmem:[#allocation2 + $0x58] sm:$0xff] %vm81_vm0, %v78_v58  ;;  %v111_v4 = vld [vmem:[#allocation2 + $0x10] ss:$2 sm:$0x7f]  ;;  %v182_v14 = vld [vmem:[#allocation2 + $0x1e] sm:$0x1]  ;;  %v197_v25 = vmax.f32 %v181_v10, %v189_v11 }
  0x12   :  { %94 = vst.msk [vmem:[#allocation2 + $0x60] sm:$0xff] %vm81_vm0, %v79_v60  ;;  %v164_v5 = vmax.f32 %v140_v1, %v149_v2  ;;  %v127_v6 = vld [vmem:[#allocation2 + $0x11] ss:$2 sm:$0x7f]  ;;  %v190_v15 = vld [vmem:[#allocation2 + $0x1f] sm:$0x1] }
  0x13   :  { %95 = vst.msk [vmem:[#allocation2 + $0x68] sm:$0xff] %vm81_vm0, %v80_v62  ;;  %v141_v7 = vmax.f32 %v111_v4, %v127_v6  ;;  %v151_v8 = vld [vmem:[#allocation2 + $0x12] ss:$2 sm:$0x7f]  ;;  %v198_v28 = vmax.f32 %v182_v14, %v190_v15  ;;  %v205_v37 = vmax.f32 %v197_v25, 0.0  ;;  %s303_s17 = smov 8  }
  0x14   :  { %107 = vst.msk [vmem:[#allocation2 + $0x70] sm:$0xff] %vm81_vm0, %v104_v0  ;;  %v113_v9 = vld [vmem:[#allocation2 + $0x20] ss:$2 sm:$0x7f]  ;;  %v183_v38 = vld [vmem:[#allocation2 + $0x2e] sm:$0x1] }
  0x15   :  { %108 = vst.msk [vmem:[#allocation2 + $0x78] sm:$0xff] %vm81_vm0, %v105_v3  ;;  %v165_v12 = vmax.f32 %v141_v7, %v151_v8  ;;  %v129_v13 = vld [vmem:[#allocation2 + $0x21] ss:$2 sm:$0x7f]  ;;  %v206_v42 = vmax.f32 %v198_v28, 0.0 }
  0x16   :  { %173 = vst.msk [vmem:[#allocation3] sm:$0x7f] %vm172_vm1, %v164_v5  ;;  %v142_v16 = vmax.f32 %v113_v9, %v129_v13  ;;  %v153_v17 = vld [vmem:[#allocation2 + $0x22] ss:$2 sm:$0x7f] }
  0x17   :  { %174 = vst.msk [vmem:[#allocation3 + $0x8] sm:$0x7f] %vm172_vm1, %v165_v12  ;;  %v115_v18 = vld [vmem:[#allocation2 + $0x30] ss:$2 sm:$0x7f] }
  0x18   :  { %v166_v19 = vmax.f32 %v142_v16, %v153_v17  ;;  %v131_v20 = vld [vmem:[#allocation2 + $0x31] ss:$2 sm:$0x7f]  ;;  %v155_v21 = vld [vmem:[#allocation2 + $0x32] ss:$2 sm:$0x7f] }
  0x19   :  { %v143_v22 = vmax.f32 %v115_v18, %v131_v20  ;;  %v117_v23 = vld [vmem:[#allocation2 + $0x40] ss:$2 sm:$0x7f]  ;;  %v133_v24 = vld [vmem:[#allocation2 + $0x41] ss:$2 sm:$0x7f] }
  0x1a   :  { %175 = vst.msk [vmem:[#allocation3 + $0x10] sm:$0x7f] %vm172_vm1, %v166_v19  ;;  %v144_v26 = vmax.f32 %v117_v23, %v133_v24  ;;  %v157_v27 = vld [vmem:[#allocation2 + $0x42] ss:$2 sm:$0x7f] }
  0x1b   :  { %v167_v29 = vmax.f32 %v143_v22, %v155_v21  ;;  %v119_v30 = vld [vmem:[#allocation2 + $0x50] ss:$2 sm:$0x7f]  ;;  %v135_v31 = vld [vmem:[#allocation2 + $0x51] ss:$2 sm:$0x7f] }
  0x1c   :  { %v168_v32 = vmax.f32 %v144_v26, %v157_v27  ;;  %v145_v33 = vmax.f32 %v119_v30, %v135_v31  ;;  %v159_v34 = vld [vmem:[#allocation2 + $0x52] ss:$2 sm:$0x7f]  ;;  %v121_v35 = vld [vmem:[#allocation2 + $0x60] ss:$2 sm:$0x7f] }
  0x1d   :  { %176 = vst.msk [vmem:[#allocation3 + $0x18] sm:$0x7f] %vm172_vm1, %v167_v29  ;;  %v137_v36 = vld [vmem:[#allocation2 + $0x61] ss:$2 sm:$0x7f] }
  0x1e   :  { %177 = vst.msk [vmem:[#allocation3 + $0x20] sm:$0x7f] %vm172_vm1, %v168_v32  ;;  %v169_v39 = vmax.f32 %v145_v33, %v159_v34  ;;  %v146_v40 = vmax.f32 %v121_v35, %v137_v36  ;;  %v161_v41 = vld [vmem:[#allocation2 + $0x62] ss:$2 sm:$0x7f] }
  0x1f   :  { %v123_v43 = vld [vmem:[#allocation2 + $0x70] ss:$2 sm:$0x7f]  ;;  %v139_v44 = vld [vmem:[#allocation2 + $0x71] ss:$2 sm:$0x7f] }
  0x20   :  { %178 = vst.msk [vmem:[#allocation3 + $0x28] sm:$0x7f] %vm172_vm1, %v169_v39  ;;  %v170_v45 = vmax.f32 %v146_v40, %v161_v41  ;;  %v147_v46 = vmax.f32 %v123_v43, %v139_v44  ;;  %v163_v47 = vld [vmem:[#allocation2 + $0x72] ss:$2 sm:$0x7f] }
  0x21   :  { %214 = vst.msk [vmem:[#allocation3 + $0x7] sm:$0x1] %vm213_vm2, %v205_v37  ;;  %v191_v48 = vld [vmem:[#allocation2 + $0x2f] sm:$0x1]  ;;  %v184_v49 = vld [vmem:[#allocation2 + $0x3e] sm:$0x1] }
  0x22   :  { %179 = vst.msk [vmem:[#allocation3 + $0x30] sm:$0x7f] %vm172_vm1, %v170_v45  ;;  %v171_v50 = vmax.f32 %v147_v46, %v163_v47  ;;  %v199_v51 = vmax.f32 %v183_v38, %v191_v48  ;;  %v192_v52 = vld [vmem:[#allocation2 + $0x3f] sm:$0x1]  ;;  %v185_v53 = vld [vmem:[#allocation2 + $0x4e] sm:$0x1] }
  0x23   :  { %215 = vst.msk [vmem:[#allocation3 + $0xf] sm:$0x1] %vm213_vm2, %v206_v42  ;;  %v200_v54 = vmax.f32 %v184_v49, %v192_v52  ;;  %v193_v55 = vld [vmem:[#allocation2 + $0x4f] sm:$0x1]  ;;  %v186_v56 = vld [vmem:[#allocation2 + $0x5e] sm:$0x1] }
  0x24   :  { %180 = vst.msk [vmem:[#allocation3 + $0x38] sm:$0x7f] %vm172_vm1, %v171_v50  ;;  %v207_v57 = vmax.f32 %v199_v51, 0.0  ;;  %v201_v58 = vmax.f32 %v185_v53, %v193_v55  ;;  %v194_v59 = vld [vmem:[#allocation2 + $0x5f] sm:$0x1] }
  0x25   :  { %v208_v60 = vmax.f32 %v200_v54, 0.0  ;;  %v202_v61 = vmax.f32 %v186_v56, %v194_v59  ;;  %v187_v62 = vld [vmem:[#allocation2 + $0x6e] sm:$0x1]  ;;  %v195_v63 = vld [vmem:[#allocation2 + $0x6f] sm:$0x1] }
  0x26   :  { %216 = vst.msk [vmem:[#allocation3 + $0x17] sm:$0x1] %vm213_vm2, %v207_v57  ;;  %v209_v0 = vmax.f32 %v201_v58, 0.0  ;;  %v203_v1 = vmax.f32 %v187_v62, %v195_v63  ;;  %v188_v2 = vld [vmem:[#allocation2 + $0x7e] sm:$0x1] }
  0x27   :  { %217 = vst.msk [vmem:[#allocation3 + $0x1f] sm:$0x1] %vm213_vm2, %v208_v60  ;;  %v210_v3 = vmax.f32 %v202_v61, 0.0  ;;  %v196_v4 = vld [vmem:[#allocation2 + $0x7f] sm:$0x1] }
  0x28   :  { %218 = vst.msk [vmem:[#allocation3 + $0x27] sm:$0x1] %vm213_vm2, %v209_v0  ;;  %v211_v5 = vmax.f32 %v203_v1, 0.0  ;;  %v204_v6 = vmax.f32 %v188_v2, %v196_v4 }
  0x29   :  { %219 = vst.msk [vmem:[#allocation3 + $0x2f] sm:$0x1] %vm213_vm2, %v210_v3 }
  0x2a   :  { %220 = vst.msk [vmem:[#allocation3 + $0x37] sm:$0x1] %vm213_vm2, %v211_v5  ;;  %v212_v7 = vmax.f32 %v204_v6, 0.0 }
  0x2c   :  { %221 = vst.msk [vmem:[#allocation3 + $0x3f] sm:$0x1] %vm213_vm2, %v212_v7 }
  0x2d   :  { %234 = dma.vmem_to_hbm [thread:$0]  %s227_s12, 1024, %s229_s15, [#allocation4], %s302_s16, %s302_s16, %s303_s17  }
  0x2e   :  { %299 = dma.done.wait [#allocation4], 1024  }
  0x2f   :  { %300 = vsyncadd [#allocation4], 4294966272 }
  0x30   :  { %239 = vsyncpa [#allocation4], 1 }

</bundles_post_ra>
